<compile_context>
chip_gen: v5e
topology: v5e:2x2
jax: 0.10.0
libtpu: 0.0.40
codegen_flags: <defaults>
</compile_context>

<pallas_src>
import numpy as np
import jax
import jax.numpy as jnp
from jax.experimental import pallas as pl
from jax.experimental.pallas import tpu as pltpu


def graphnorm_kernel(x_ref, cnt_ref, p_ref, o_ref):
    """One grid step == G lane-blocks, each lane-block = L graphs packed on lanes.

    x_ref:   (G, Tn, LD)   node features (f32/bf16)
    cnt_ref: (G, 2,  LD)   row 0 = per-lane node count (float32, >= 1), row 1 = 1/count
    p_ref:   (3, 1,  LD)   row 0 = weight, row 1 = bias, row 2 = mean_scale (lane-tiled)
    o_ref:   (G, Tn, LD)
    """
    x = x_ref[...].astype(jnp.float32)                        # (G, Tn, LD)
    cnt = cnt_ref[:, 0:1, :]                                   # (G, 1, LD), >= 1
    inv_cnt = cnt_ref[:, 1:2, :]                               # (G, 1, LD)

    # Padded rows were gathered from the appended all-zero row, so the unmasked
    # sum over the node axis is already exact (review opt #1: no where/mask here).
    mean = jnp.sum(x, axis=1, keepdims=True) * inv_cnt         # (G, 1, LD)

    ms = p_ref[2:3]                                            # (1, 1, LD)
    sub = x - mean * ms                                        # (G, Tn, LD)

    # Variance still needs the mask: pad rows of `sub` equal -mean*ms, not 0.
    tn = x.shape[1]
    rows = jax.lax.broadcasted_iota(jnp.int32, (1, tn, 1), 1).astype(jnp.float32)
    mask = rows < cnt                                          # -> (G, Tn, LD)
    sub_m = jnp.where(mask, sub, 0.0)
    var = jnp.sum(sub_m * sub_m, axis=1, keepdims=True) * inv_cnt
    inv_std = jax.lax.rsqrt(var + 1e-6)                        # EUP, (G, 1, LD)

    scale = p_ref[0:1] * inv_std                               # fold weight into scale
    o_ref[...] = (sub * scale + p_ref[1:2]).astype(o_ref.dtype)


def _vmem_budget():
    """Pick (per-block payload target, vmem_limit_bytes, two_tensorcores)."""
    vmem = 128 << 20
    try:
        info = pltpu.get_tpu_info()
        vmem = int(getattr(info, "vmem_capacity_bytes", vmem))
    except Exception:
        pass
    if vmem <= (64 << 20):
        # v7x-like: 64 MiB VMEM per TensorCore, 2 TCs per chip.
        return (2 << 20, 48 << 20, True)
    # v5e / v6e: 128 MiB physical; raise the scoped limit above the 16/32 MiB default.
    return (4 << 20, 64 << 20, False)


def norm_layer_pallas(x, batch_num_nodes, weight, bias, mean_scale):
    """x: [N, D] float array, batch_num_nodes: python list of ints (static)."""
    x = jnp.asarray(x)
    N, D = x.shape
    counts = np.asarray(batch_num_nodes, dtype=np.int64)
    B = int(counts.shape[0])

    # --- lane packing: pad D so the packed lane dim LD is a multiple of 128 ---
    if D >= 128:
        Dp = ((D + 127) // 128) * 128
        L = 1
    else:
        Dp = D
        while 128 % Dp != 0:
            Dp += 1
        L = 128 // Dp
    LD = L * Dp

    Tn = int(max(1, counts.max() if B > 0 else 1))
    Tn = ((Tn + 7) // 8) * 8                                   # sublane-align rows
    # TODO(synk): bucket graphs by node count (few static Tn buckets) and pass
    # counts/offsets via PrefetchScalarGridSpec scalar prefetch so skewed batches
    # don't pay max(counts) padding and new batch compositions don't retrace.

    block_target, vmem_limit, two_cores = _vmem_budget()

    Bp = -(-B // L)                                            # number of lane-blocks
    bytes_per_lane_block = Tn * LD * 4
    G = max(1, min(Bp, block_target // max(1, bytes_per_lane_block)))
    if two_cores and Bp >= 2:
        G = min(G, -(-Bp // 2))                                # ensure Bg >= 2 on v7x
    Bg = -(-Bp // G)                                           # grid size
    Bp_pad = Bg * G
    B_slots = Bp_pad * L

    # --- static gather indices: packed slot (rb, r, lg) -> node row (or zero row) ---
    offsets = np.zeros(B + 1, dtype=np.int64)
    offsets[1:] = np.cumsum(counts)
    gidx = np.full((Bp_pad, Tn, L), N, dtype=np.int32)         # N -> appended zero row
    for g in range(B):
        rb, lg = divmod(g, L)
        c = int(counts[g])
        if c > 0:
            gidx[rb, :c, lg] = np.arange(offsets[g], offsets[g] + c, dtype=np.int32)

    xD = x if Dp == D else jnp.pad(x, ((0, 0), (0, Dp - D)))
    x_ext = jnp.concatenate([xD, jnp.zeros((1, Dp), x.dtype)], axis=0)
    xp = x_ext[jnp.asarray(gidx)].reshape(Bp_pad, Tn, LD)      # single gather in
    # TODO(synk): keep this packed (Bp_pad, Tn, LD) layout end-to-end in the model
    # (or scatter results from inside the kernel via pl.ANY + make_async_copy) so the
    # two wrapper gathers — the dominant extra HBM traffic — disappear entirely.

    # per-lane counts (>= 1) and their reciprocals, stacked along axis 1
    cnt_np = np.ones(B_slots, dtype=np.float32)
    cnt_np[:B] = np.maximum(counts, 1).astype(np.float32)
    cnt_lanes = np.repeat(cnt_np.reshape(Bp_pad, 1, L), Dp, axis=-1).reshape(Bp_pad, 1, LD)
    cnt_stack = jnp.asarray(
        np.concatenate([cnt_lanes, 1.0 / cnt_lanes], axis=1))  # (Bp_pad, 2, LD)

    def tile_param(p):
        p = jnp.asarray(p, jnp.float32).reshape(1, D)
        if Dp != D:
            p = jnp.pad(p, ((0, 0), (0, Dp - D)))
        return jnp.tile(p, (1, L)).reshape(1, 1, LD)

    params = jnp.concatenate(
        [tile_param(weight), tile_param(bias), tile_param(mean_scale)], axis=0)  # (3,1,LD)

    out_p = pl.pallas_call(
        graphnorm_kernel,
        out_shape=jax.ShapeDtypeStruct((Bp_pad, Tn, LD), x.dtype),
        grid_spec=pltpu.PrefetchScalarGridSpec(
            num_scalar_prefetch=0,
            grid=(Bg,),
            in_specs=[
                pl.BlockSpec((G, Tn, LD), lambda i: (i, 0, 0)),   # x (lane-packed)
                pl.BlockSpec((G, 2, LD), lambda i: (i, 0, 0)),    # count / 1/count
                pl.BlockSpec((3, 1, LD), lambda i: (0, 0, 0)),    # weight/bias/mean_scale
            ],
            out_specs=pl.BlockSpec((G, Tn, LD), lambda i: (i, 0, 0)),
        ),
        compiler_params=pltpu.CompilerParams(
            dimension_semantics=("parallel",),
            vmem_limit_bytes=vmem_limit),
    )(xp, cnt_stack, params)

    # --- single static gather back to the original [N, D] node layout ---
    out_pr = out_p.reshape(Bp_pad, Tn, L, Dp)
    blk = np.empty(N, dtype=np.int32)
    row = np.empty(N, dtype=np.int32)
    lane = np.empty(N, dtype=np.int32)
    for g in range(B):
        c = int(counts[g])
        s, e = int(offsets[g]), int(offsets[g] + c)
        blk[s:e] = g // L
        lane[s:e] = g % L
        row[s:e] = np.arange(c, dtype=np.int32)
    out = out_pr[jnp.asarray(blk), jnp.asarray(row), jnp.asarray(lane)]   # (N, Dp)
    return out[:, :D] if Dp != D else out


def norm_layer_ref(x, batch_num_nodes, weight, bias, mean_scale):
    """Pure-JAX reference mirroring the PyTorch forward."""
    outs = []
    off = 0
    for c in batch_num_nodes:
        seg = x[off:off + c]
        mean = seg.mean(axis=0, keepdims=True)
        sub = seg - mean * mean_scale
        std = jnp.sqrt((sub ** 2).mean(axis=0, keepdims=True) + 1e-6)
        outs.append(weight * sub / std + bias)
        off += c
    return jnp.concatenate(outs, axis=0)


if __name__ == "__main__":
    hidden_dim = 32
    key = jax.random.PRNGKey(0)
    kx, kw, kb, km, kx2 = jax.random.split(key, 5)

    # __init__ uses ones/ones/zeros; perturb deterministically so params are exercised.
    weight = jnp.ones((hidden_dim,), jnp.float32) + 0.1 * jax.random.normal(kw, (hidden_dim,))
    bias = jnp.zeros((hidden_dim,), jnp.float32) + 0.1 * jax.random.normal(kb, (hidden_dim,))
    mean_scale = jnp.ones((hidden_dim,), jnp.float32) + 0.1 * jax.random.normal(km, (hidden_dim,))

    # test 1: original small batch
    batch_num_nodes = [5, 8, 3]
    N = sum(batch_num_nodes)
    x = jax.random.normal(kx, (N, hidden_dim), dtype=jnp.float32)
    out = jax.block_until_ready(
        norm_layer_pallas(x, batch_num_nodes, weight, bias, mean_scale))
    ref = norm_layer_ref(x, batch_num_nodes, weight, bias, mean_scale)
    np.testing.assert_allclose(np.asarray(out), np.asarray(ref), rtol=1e-4, atol=1e-4)

    # test 2: more graphs than one lane-block (exercises lane packing + padded slots,
    # and the Bg >= 2 split on two-TensorCore chips)
    batch_num_nodes2 = [1, 7, 12, 4, 9, 2, 6, 11, 3]
    N2 = sum(batch_num_nodes2)
    x2 = jax.random.normal(kx2, (N2, hidden_dim), dtype=jnp.float32)
    out2 = jax.block_until_ready(
        norm_layer_pallas(x2, batch_num_nodes2, weight, bias, mean_scale))
    ref2 = norm_layer_ref(x2, batch_num_nodes2, weight, bias, mean_scale)
    np.testing.assert_allclose(np.asarray(out2), np.asarray(ref2), rtol=1e-4, atol=1e-4)

    print("KERNEL_OK")
</pallas_src>

<mosaic_0001>
module attributes {stable_mosaic.version = 11 : i64} {
  func.func @graphnorm_kernel(%arg0: i32, %arg1: memref<1x8x128xf32, #tpu.memory_space<vmem>>, %arg2: memref<1x2x128xf32, #tpu.memory_space<vmem>>, %arg3: memref<3x1x128xf32, #tpu.memory_space<vmem>>, %arg4: memref<1x8x128xf32, #tpu.memory_space<vmem>>) attributes {dimension_semantics = [#tpu.dimension_semantics<parallel>], iteration_bounds = array<i64: 1>, scalar_prefetch = 0 : i64, scratch_operands = 0 : i64, tpu.core_type = #tpu.core_type<tc>, window_params = [{transform_indices = @transform_0, window_bounds = array<i64: 1, 8, 128>}, {transform_indices = @transform_1, window_bounds = array<i64: 1, 2, 128>}, {pipeline_mode = #tpu.pipeline_mode<synchronous>, transform_indices = @transform_2, window_bounds = array<i64: 3, 1, 128>}, {transform_indices = @transform_3, window_bounds = array<i64: 1, 8, 128>}]} {
    %c0 = arith.constant 0 : index
    %c0_0 = arith.constant 0 : index
    %c0_1 = arith.constant 0 : index
    %0 = vector.load %arg1[%c0, %c0_0, %c0_1] : memref<1x8x128xf32, #tpu.memory_space<vmem>>, vector<1x8x128xf32>
    %c0_2 = arith.constant 0 : index
    %c0_3 = arith.constant 0 : index
    %c0_4 = arith.constant 0 : index
    %1 = vector.load %arg2[%c0_2, %c0_3, %c0_4] : memref<1x2x128xf32, #tpu.memory_space<vmem>>, vector<1x1x128xf32>
    %c0_5 = arith.constant 0 : index
    %c1 = arith.constant 1 : index
    %c0_6 = arith.constant 0 : index
    %2 = vector.load %arg2[%c0_5, %c1, %c0_6] : memref<1x2x128xf32, #tpu.memory_space<vmem>>, vector<1x1x128xf32>
    %cst = arith.constant dense<0.000000e+00> : vector<1x128xf32>
    %3 = vector.multi_reduction <add>, %0, %cst [1] : vector<1x8x128xf32> to vector<1x128xf32>
    %4 = vector.shape_cast %3 : vector<1x128xf32> to vector<1x1x128xf32>
    %5 = arith.mulf %4, %2 : vector<1x1x128xf32>
    %c2 = arith.constant 2 : index
    %c0_7 = arith.constant 0 : index
    %c0_8 = arith.constant 0 : index
    %6 = vector.load %arg3[%c2, %c0_7, %c0_8] : memref<3x1x128xf32, #tpu.memory_space<vmem>>, vector<1x1x128xf32>
    %7 = arith.mulf %5, %6 : vector<1x1x128xf32>
    %8 = vector.broadcast %7 : vector<1x1x128xf32> to vector<1x8x128xf32>
    %9 = arith.subf %0, %8 : vector<1x8x128xf32>
    %10 = tpu.iota {dimensions = array<i32: 1>} : vector<1x8x1xi32>
    %11 = arith.sitofp %10 : vector<1x8x1xi32> to vector<1x8x1xf32>
    %12 = vector.broadcast %11 : vector<1x8x1xf32> to vector<1x8x128xf32>
    %13 = vector.broadcast %1 : vector<1x1x128xf32> to vector<1x8x128xf32>
    %14 = arith.cmpf olt, %12, %13 : vector<1x8x128xf32>
    %cst_9 = arith.constant 0.000000e+00 : f32
    %15 = vector.broadcast %cst_9 : f32 to vector<1x8x128xf32>
    %16 = arith.select %14, %9, %15 : vector<1x8x128xi1>, vector<1x8x128xf32>
    %17 = arith.mulf %16, %16 : vector<1x8x128xf32>
    %cst_10 = arith.constant dense<0.000000e+00> : vector<1x128xf32>
    %18 = vector.multi_reduction <add>, %17, %cst_10 [1] : vector<1x8x128xf32> to vector<1x128xf32>
    %19 = vector.shape_cast %18 : vector<1x128xf32> to vector<1x1x128xf32>
    %20 = arith.mulf %19, %2 : vector<1x1x128xf32>
    %cst_11 = arith.constant 9.99999997E-7 : f32
    %21 = vector.broadcast %cst_11 : f32 to vector<1x1x128xf32>
    %22 = arith.addf %20, %21 : vector<1x1x128xf32>
    %23 = math.rsqrt %22 : vector<1x1x128xf32>
    %c0_12 = arith.constant 0 : index
    %c0_13 = arith.constant 0 : index
    %c0_14 = arith.constant 0 : index
    %24 = vector.load %arg3[%c0_12, %c0_13, %c0_14] : memref<3x1x128xf32, #tpu.memory_space<vmem>>, vector<1x1x128xf32>
    %25 = arith.mulf %24, %23 : vector<1x1x128xf32>
    %26 = vector.broadcast %25 : vector<1x1x128xf32> to vector<1x8x128xf32>
    %27 = arith.mulf %9, %26 : vector<1x8x128xf32>
    %c1_15 = arith.constant 1 : index
    %c0_16 = arith.constant 0 : index
    %c0_17 = arith.constant 0 : index
    %28 = vector.load %arg3[%c1_15, %c0_16, %c0_17] : memref<3x1x128xf32, #tpu.memory_space<vmem>>, vector<1x1x128xf32>
    %29 = vector.broadcast %28 : vector<1x1x128xf32> to vector<1x8x128xf32>
    %30 = arith.addf %27, %29 : vector<1x8x128xf32>
    %c0_18 = arith.constant 0 : index
    %c0_19 = arith.constant 0 : index
    %c0_20 = arith.constant 0 : index
    %31 = vector.load %arg4[%c0_18, %c0_19, %c0_20] : memref<1x8x128xf32, #tpu.memory_space<vmem>>, vector<1x8x128xf32>
    tpu.vector_store %arg4[%c0_18, %c0_19, %c0_20], %30 {strides = array<i32>} : memref<1x8x128xf32, #tpu.memory_space<vmem>>, vector<1x8x128xf32>,
    return
  }
  func.func @transform_0(%arg0: i32) -> (i32, i32, i32) {
    %c0_i32 = arith.constant 0 : i32
    %c0_i32_0 = arith.constant 0 : i32
    %c0_i32_1 = arith.constant 0 : i32
    return %arg0, %c0_i32, %c0_i32_0 : i32, i32, i32
  }
  func.func @transform_1(%arg0: i32) -> (i32, i32, i32) {
    %c0_i32 = arith.constant 0 : i32
    %c0_i32_0 = arith.constant 0 : i32
    %c0_i32_1 = arith.constant 0 : i32
    return %arg0, %c0_i32, %c0_i32_0 : i32, i32, i32
  }
  func.func @transform_2(%arg0: i32) -> (i32, i32, i32) {
    %c0_i32 = arith.constant 0 : i32
    %c0_i32_0 = arith.constant 0 : i32
    %c0_i32_1 = arith.constant 0 : i32
    %c0_i32_2 = arith.constant 0 : i32
    return %c0_i32, %c0_i32_0, %c0_i32_1 : i32, i32, i32
  }
  func.func @transform_3(%arg0: i32) -> (i32, i32, i32) {
    %c0_i32 = arith.constant 0 : i32
    %c0_i32_0 = arith.constant 0 : i32
    %c0_i32_1 = arith.constant 0 : i32
    return %arg0, %c0_i32, %c0_i32_0 : i32, i32, i32
  }
}

</mosaic_0001>

<bundles_post_ra>
// kernel: tpu_custom_call.1
= control target key start
LH: loop header
LB: loop body
LE: loop exit
PB: predicated region body
PF: predicated region fallthrough
CT: control target
= control target key end

     0   :  { %8 = vsyncpa [#allocation3], 0  ;;  %s279_s0 = inlined_call_operand.hbm [shape: f32[1,8,128], index: 0, kind: input, shape index: {}]   ;;  %s280_s1 = inlined_call_operand.hbm [shape: f32[1,2,128], index: 1, kind: input, shape index: {}]   ;;  %s281_s2 = inlined_call_operand.hbm [shape: f32[3,1,128], index: 2, kind: input, shape index: {}]   ;;  %s282_s3 = inlined_call_operand.hbm [shape: f32[1,8,128], index: 3, kind: output, shape index: {}]  }
   0x1   :  { %9 = vsyncpa [#allocation6], 0  ;;  %s27_s14 = sshll.u32 %s280_s1, 4  ;;  %s28_s14 = int_to_ptr.hbm [resolvable:$true] %s27_s14 }
   0x2   :  { %10 = vsyncpa [#allocation4], 0  ;;  %s241_s15 = smov [#allocation5]   ;;  %s16_s19 = sshll.u32 %s279_s0, 4  ;;  %s17_s19 = int_to_ptr.hbm [resolvable:$true] %s16_s19 }
   0x3   :  { %s29_s16 = sshll.u32 %s241_s15, 4  ;;  %s242_s20 = smov [#allocation2]   ;;  %s30_s16 = int_to_ptr.vmem [resolvable:$true] %s29_s16 }
   0x4   :  { %32 = dma.hbm_to_vmem [thread:$0]  %s28_s14, 32, %s30_s16, [#allocation6]  }
   0x5   :  { %s18_s21 = sshll.u32 %s242_s20, 4  ;;  %s37_s24 = sshll.u32 %s281_s2, 4  ;;  %s19_s21 = int_to_ptr.vmem [resolvable:$true] %s18_s21  ;;  %s38_s24 = int_to_ptr.hbm [resolvable:$true] %s37_s24 }
   0x6   :  { %21 = dma.hbm_to_vmem [thread:$0]  %s17_s19, 128, %s19_s21, [#allocation3]  }
   0x7   :  { %s243_s1 = smov [#allocation7]   ;;  %s244_s26 = smov 16  }
   0x8   :  { %s39_s25 = sshll.u32 %s243_s1, 4  ;;  %s245_s27 = smov 1   ;;  %s40_s25 = int_to_ptr.vmem [resolvable:$true] %s39_s25 }
   0x9   :  { %45 = dma.hbm_to_vmem [thread:$0]  %s38_s24, 48, %s40_s25, [#allocation6], %s244_s26, %s244_s26, %s245_s27  }
   0xa   :  { %235 = dma.done.wait [#allocation3], 128  }
   0xb   :  { %236 = vsyncadd [#allocation3], 4294967168 }
   0xc   :  { %237 = dma.done.wait [#allocation6], 80  }
   0xd   :  { %238 = vsyncadd [#allocation6], 4294967216  ;;  %v58_v0 = vld [vmem:[#allocation2] sm:$0xff]  ;;  %v73_v4 = vlaneseq  ;;  %v60_v7 = vld [vmem:[#allocation5 + $0x1] sm:$0x1]  ;;  %s246_s0 = smov [#allocation8]  }
   0xe   :  { %v61_v1 = vrot.slane %v58_v0, 4  ;;  %v69_v10 = vld [vmem:[#allocation7 + $0x2] sm:$0x1]  ;;  %v135_v13 = vld [vmem:[#allocation5] ss:$0 sm:$0xff]  ;;  %s116_s2 = sshll.u32 %s246_s0, 4  ;;  %s117_s2 = int_to_ptr.vmem [resolvable:$true] %s116_s2 }
   0xf   :  { %v74_v8 = vshrl.u32 %v73_v4, 7  ;;  %v98_v33 = vld [vmem:[#allocation7] sm:$0x1]  ;;  %v136_v37 = vld [vmem:[#allocation7 + $0x1] ss:$0 sm:$0xff]  ;;  %s118_s30 = sshll.u32 %s282_s3, 4  ;;  %s119_s30 = int_to_ptr.hbm [resolvable:$true] %s118_s30 }
  0x10   :  { %v62_v2 = vadd.f32 %v61_v1, %v58_v0 }
  0x11   :  { %v75_v12 = vcvt.s32.f32 %v74_v8 }
  0x12   :  { %v63_v3 = vrot.slane %v62_v2, 2 }
  0x13   :  { %vm77_vm0 = vcmp.lt.f32.partialorder %v75_v12, %v135_v13 }
  0x14   :  { %v64_v5 = vadd.f32 %v63_v3, %v62_v2 }
  0x16   :  { %v65_v6 = vrot.slane %v64_v5, 1 }
  0x18   :  { %v66_v9 = vadd.f32 %v65_v6, %v64_v5 }
  0x1a   :  { %v67_v11 = vmul.f32 %v66_v9, %v60_v7 }
  0x1c   :  { %v70_v14 = vmul.f32 %v69_v10, %v67_v11 }
  0x1e   :  { %v71_v15 = vperm.slane %v70_v14, 0 }
  0x20   :  { %v72_v16 = vsub.f32 %v58_v0, %v71_v15 }
  0x22   :  { %v78_v17 = vsel %vm77_vm0, %v72_v16, 0.0 }
  0x23   :  { %v79_v18 = vmul.f32 %v78_v17, %v78_v17 }
  0x25   :  { %v80_v19 = vrot.slane %v79_v18, 4 }
  0x27   :  { %v81_v20 = vadd.f32 %v80_v19, %v79_v18 }
  0x29   :  { %v82_v21 = vrot.slane %v81_v20, 2 }
  0x2b   :  { %v83_v22 = vadd.f32 %v82_v21, %v81_v20 }
  0x2d   :  { %v84_v23 = vrot.slane %v83_v22, 1 }
  0x2f   :  { %v85_v24 = vadd.f32 %v84_v23, %v83_v22 }
  0x31   :  { %v86_v25 = vmul.f32 %v85_v24, %v60_v7 }
  0x33   :  { %v87_v26 = vadd.f32 1e-06, %v86_v25 }
  0x35   :  { %137 = vrsqrt.f32 %v87_v26  ;;  %vm94_vm1 = vweird.f32 %v87_v26 }
  0x3b   :  { %v138_v27 = vpop.eup %137 }
  0x3c   :  { %v89_v28 = vmul.f32 %v138_v27, %v87_v26  ;;  %vm95_vm2 = vweird.f32 %v138_v27 }
  0x3d   :  { %vm96_vm3 = vmor %vm94_vm1, %vm95_vm2 }
  0x3e   :  { %v90_v29 = vmul.f32 %v138_v27, %v89_v28 }
  0x40   :  { %v91_v30 = vmul.f32 0.5, %v90_v29 }
  0x42   :  { %v92_v31 = vsub.f32 1.5, %v91_v30 }
  0x44   :  { %v93_v32 = vmul.f32 %v138_v27, %v92_v31 }
  0x46   :  { %v97_v34 = vsel %vm96_vm3, %v138_v27, %v93_v32 }
  0x47   :  { %v99_v35 = vmul.f32 %v98_v33, %v97_v34 }
  0x49   :  { %v101_v36 = vperm.slane %v99_v35, 0 }
  0x4b   :  { %v103_v38 = vmul.f32 %v101_v36, %v72_v16 }
  0x4d   :  { %v109_v39 = vadd.f32 %v136_v37, %v103_v38 }
  0x4f   :  { %110 = vst [vmem:[#allocation8] sm:$0xff] %v109_v39 }
  0x50   :  { %121 = dma.vmem_to_hbm [thread:$0]  %s117_s2, 128, %s119_s30, [#allocation4]  }
  0x51   :  { %239 = dma.done.wait [#allocation4], 128  }
  0x52   :  { %240 = vsyncadd [#allocation4], 4294967168 }
  0x53   :  { %126 = vsyncpa [#allocation3], 1 }
  0x54   :  { %127 = vsyncpa [#allocation6], 1 }
  0x55   :  { %128 = vsyncpa [#allocation4], 1 }

</bundles_post_ra>
